<compile_context>
chip_gen: v7x
topology: tpu7x:2x2x1
jax: 0.10.0
libtpu: 0.0.40
codegen_flags: <defaults>
</compile_context>

<pallas_src>
import functools
import math

import jax
import jax.numpy as jnp
from jax import lax
from jax.experimental import pallas as pl
from jax.experimental.pallas import tpu as pltpu


def _round_up(x: int, m: int) -> int:
    return ((x + m - 1) // m) * m


def som_labelling_kernel(x_ref, neurons_ref, wn2_ref, gauss_ref, bmu_ref, *,
                         inv_sigma: float):
    """One batch tile: x (TB, D), neurons (N, D), wn2 (N, 1)
       -> gauss (N, TB), bmu (1, TB)."""
    w = neurons_ref[...]                                   # (N, D)  VMEM-resident
    x = x_ref[...]                                         # (TB, D) streams
    wn2 = wn2_ref[...]                                     # (N, 1)  precomputed ||w||^2

    # Squared distances on the MXU, RHS transposed in-flight (no XLU transpose
    # of the whole input tile):  d2[n, b] = ||w_n||^2 + ||x_b||^2 - 2 w_n.x_b
    xw = lax.dot_general(w, x, dimension_numbers=(((1,), (1,)), ((), ())),
                         preferred_element_type=jnp.float32)        # (N, TB) MXU
    xn2 = jnp.transpose(jnp.sum(x * x, axis=-1, keepdims=True))     # (1, TB)
    d2 = jnp.maximum(wn2 + xn2 - 2.0 * xw, 0.0)            # clamp f32 cancellation

    # BMU on squared distances (argmin invariant under sqrt): keeps the XLU
    # min-reduce + integer iota/select off the EUP sqrt/exp critical chain.
    n = d2.shape[0]
    bmu_d2 = jnp.min(d2, axis=0, keepdims=True)                     # (1, TB)
    n_iota = lax.broadcasted_iota(jnp.int32, d2.shape, 0)
    bmu = jnp.min(jnp.where(d2 == bmu_d2, n_iota, n),
                  axis=0, keepdims=True)                            # (1, TB) int32

    # Normalized Gaussian neighbourhood with a single exp:
    #   exp(-d/s) / exp(-bmu_d/s) == exp((bmu_d - d)/s)
    # (the torch bmu_g==0 guard only triggers on f32 exp underflow, d>~88*sigma,
    #  and is intentionally dropped.)
    d = jnp.sqrt(d2)                                                # (N, TB) EUP
    bmu_d = jnp.sqrt(bmu_d2)                                        # (1, TB) row only
    gauss_ref[...] = jnp.exp((bmu_d - d) * inv_sigma).astype(gauss_ref.dtype)
    bmu_ref[...] = bmu


def som_labelling_forward(x, y, neurons, labels_flat, sigma,
                          activities, labels_count, *,
                          block_b: int = 256,
                          gauss_dtype=jnp.float32):
    """Training-mode forward of SOMLabelling.

    x: (B, D) inputs, y: (B, C) one-hot labels, neurons: (N, D),
    labels_flat: (N, C) one-hot SOM labels.
    Returns (labels_at_bmu (B, C), updated_activities (N, C),
             updated_labels_count (C,)).

    gauss_dtype: set to jnp.bfloat16 on HBM-bound chips (v5e) to halve the
    dominant writeback stream; default f32 preserves reference numerics.
    """
    B, D = x.shape
    N = neurons.shape[0]

    # --- generation-aware VMEM ceiling: 75% of physical VMEM
    #     (48 MiB on v7x, 96 MiB on v5e/v6e); safe fallback if query fails. ---
    try:
        phys_vmem = int(pltpu.get_tpu_info().vmem_capacity_bytes)
    except Exception:
        phys_vmem = 64 * 1024 * 1024
    vmem_cap = (phys_vmem * 3) // 4

    # --- batch tile: multiple of 128 (lane-dense gauss stores, fills the
    #     256-wide MXU on v6e/v7x), >= 2 grid steps when B permits so the
    #     "parallel" axis actually spans both v7x TensorCores. ---
    if B >= 2 * 128:
        tb = max(128, min(block_b, _round_up((B + 1) // 2, 128)))
    elif B >= 128:
        tb = 128
    else:
        tb = max(8, _round_up(B, 8))

    gauss_itemsize = jnp.dtype(gauss_dtype).itemsize

    def tile_bytes(t):
        return (4 * (2 * t * D           # x tile, double-buffered
                     + N * D + N         # neurons + wn2, single-buffered
                     + 6 * N * t         # live (N, t) f32 temporaries
                     + 2 * 2 * t)        # bmu out, double-buffered
                + gauss_itemsize * 2 * N * t)   # gauss out, double-buffered

    while tb > 128 and tile_bytes(tb) > vmem_cap:
        tb -= 128

    b_pad = _round_up(B, tb)
    x_p = jnp.pad(x, ((0, b_pad - B), (0, 0))) if b_pad != B else x
    grid = (b_pad // tb,)

    # Hoisted neuron norms: computed once, resident across all grid steps.
    wn2 = jnp.sum(neurons * neurons, axis=-1, keepdims=True)        # (N, 1)

    vmem_limit = int(min(max(2 * tile_bytes(tb), 32 * 1024 * 1024), vmem_cap))

    # 1/sigma baked in as a trace-time constant (sigma is a Python float).
    kernel = functools.partial(som_labelling_kernel,
                               inv_sigma=float(1.0 / float(sigma)))

    out_shape = (
        jax.ShapeDtypeStruct((N, b_pad), gauss_dtype),   # gauss, batch-last
        jax.ShapeDtypeStruct((1, b_pad), jnp.int32),     # bmu flat index
    )
    out_specs = (
        pl.BlockSpec((N, tb), lambda i: (0, i)),
        pl.BlockSpec((1, tb), lambda i: (0, i)),
    )
    compiler_params = pltpu.CompilerParams(
        dimension_semantics=("parallel",),
        vmem_limit_bytes=vmem_limit,
    )
    cost_estimate = pl.CostEstimate(
        flops=2 * b_pad * N * D + 5 * b_pad * N,
        transcendentals=2 * b_pad * N,                   # sqrt + exp per (n, b)
        bytes_accessed=(4 * (b_pad * D + N * D + N + b_pad)
                        + gauss_itemsize * N * b_pad),
    )

    def make_in_specs(single_buffer_residents):
        resident_kw = ({"pipeline_mode": pl.Buffered(1)}
                       if single_buffer_residents else {})
        return [
            pl.BlockSpec((tb, D), lambda i: (i, 0)),                 # x (streams)
            pl.BlockSpec((N, D), lambda i: (0, 0), **resident_kw),   # neurons
            pl.BlockSpec((N, 1), lambda i: (0, 0), **resident_kw),   # ||w||^2
        ]

    def run(in_specs):
        return pl.pallas_call(
            kernel,
            out_shape=out_shape,
            grid=grid,
            in_specs=in_specs,
            out_specs=out_specs,
            compiler_params=compiler_params,
            cost_estimate=cost_estimate,
        )(x_p, neurons, wn2)

    try:
        # Single-buffer the constant-index (resident) inputs: halves their
        # VMEM footprint (matters most on v7x's 64 MiB).
        gauss_t, bmu_row = run(make_in_specs(True))
    except Exception:
        # TODO(synk): drop fallback once Buffered(1) pipeline_mode is
        # universally supported.
        gauss_t, bmu_row = run(make_in_specs(False))

    bmu = bmu_row[0, :B]                                  # (B,) flat BMU indices
    gauss_batch_last = gauss_t[:, :B].astype(jnp.float32)  # (N, B) == movedim(.,0,-1)

    # labels[bmu_location]: flat gather == unravel + split gather.
    out_labels = labels_flat[bmu]                         # (B, C)

    # --- glue: buffer side effects (stateless re-implementation) ---
    truth = jnp.argmax(y, axis=-1)                        # (B,)
    # torch `activities[..., truth] += v` is a non-accumulating index_put; for
    # duplicate classes in a batch one column wins (same caveat as torch).
    new_activities = activities.at[:, truth].set(
        activities[:, truth] + gauss_batch_last)
    new_labels_count = labels_count.at[truth].set(labels_count[truth] + 1)
    return out_labels, new_activities, new_labels_count


if __name__ == "__main__":
    # Module configuration (small, consistent with SOMLabelling.__init__)
    som_out_features = (8, 8)          # SOM grid
    in_features = 16                   # som.in_features
    num_classes = 4                    # out_features = (4,)
    sigma = 1.0
    B = 2

    N = math.prod(som_out_features)    # 64 neurons

    key = jax.random.PRNGKey(0)
    k_lab, k_neu, k_x = jax.random.split(key, 3)

    # Parameters (deterministic synthetic init, as in __init__)
    label_ids = jax.random.randint(k_lab, som_out_features, 0, num_classes)
    labels = jax.nn.one_hot(label_ids, num_classes, dtype=jnp.float32)   # (8,8,C)
    labels_flat = labels.reshape(N, num_classes)                         # (N, C)
    neurons = jax.random.normal(k_neu, (N, in_features), dtype=jnp.float32)
    activities = jnp.zeros((N, num_classes), dtype=jnp.float32)
    labels_count = jnp.zeros((num_classes,), dtype=jnp.int32)

    # Inputs (distinct truth classes keep the duplicate-index scatter check
    # deterministic in the self-test)
    x = jax.random.normal(k_x, (B, in_features), dtype=jnp.float32)
    y = jax.nn.one_hot(jnp.arange(B) % num_classes, num_classes,
                       dtype=jnp.float32)

    out, new_act, new_cnt = som_labelling_forward(
        x, y, neurons, labels_flat, sigma, activities, labels_count)
    jax.block_until_ready((out, new_act, new_cnt))

    assert out.shape == (B, num_classes)
    assert new_act.shape == (N, num_classes)
    assert new_cnt.shape == (num_classes,)

    # Plain-JAX reference of the torch training branch.
    diff = x[:, None, :] - neurons[None, :, :]
    d2_ref = jnp.sum(diff * diff, axis=-1)
    d_ref = jnp.sqrt(d2_ref)
    bmu_ref = jnp.argmin(d2_ref, axis=-1)
    bmu_g = jnp.exp(-jnp.sqrt(jnp.min(d2_ref, axis=-1, keepdims=True)) / sigma)
    g_ref = jnp.where(bmu_g == 0.0, 0.0, jnp.exp(-d_ref / sigma) / bmu_g)
    truth_ref = jnp.argmax(y, axis=-1)
    act_ref = activities.at[:, truth_ref].set(activities[:, truth_ref] + g_ref.T)
    cnt_ref = labels_count.at[truth_ref].set(labels_count[truth_ref] + 1)

    assert jnp.allclose(out, labels_flat[bmu_ref], atol=1e-5)
    assert jnp.allclose(new_act, act_ref, atol=1e-4)
    assert jnp.array_equal(new_cnt, cnt_ref)

    print("KERNEL_OK")
</pallas_src>

<mosaic_0001>
module attributes {stable_mosaic.version = 11 : i64} {
  func.func @som_labelling_kernel(%arg0: i32, %arg1: memref<8x16xf32, #tpu.memory_space<vmem>>, %arg2: memref<64x16xf32, #tpu.memory_space<vmem>>, %arg3: memref<64x1xf32, #tpu.memory_space<vmem>>, %arg4: memref<64x8xf32, #tpu.memory_space<vmem>>, %arg5: memref<1x8xi32, #tpu.memory_space<vmem>>) attributes {dimension_semantics = [#tpu.dimension_semantics<parallel>], iteration_bounds = array<i64: 1>, scalar_prefetch = 0 : i64, scratch_operands = 0 : i64, tpu.core_type = #tpu.core_type<tc>, window_params = [{transform_indices = @transform_0, window_bounds = array<i64: 8, 16>}, {pipeline_mode = #tpu.pipeline_mode<synchronous>, transform_indices = @transform_1, window_bounds = array<i64: 64, 16>}, {pipeline_mode = #tpu.pipeline_mode<synchronous>, transform_indices = @transform_2, window_bounds = array<i64: 64, 1>}, {transform_indices = @transform_3, window_bounds = array<i64: 64, 8>}, {transform_indices = @transform_4, window_bounds = array<i64: 1, 8>}]} {
    %c0 = arith.constant 0 : index
    %c0_0 = arith.constant 0 : index
    %0 = vector.load %arg2[%c0, %c0_0] : memref<64x16xf32, #tpu.memory_space<vmem>>, vector<64x16xf32>
    %c0_1 = arith.constant 0 : index
    %c0_2 = arith.constant 0 : index
    %1 = vector.load %arg1[%c0_1, %c0_2] : memref<8x16xf32, #tpu.memory_space<vmem>>, vector<8x16xf32>
    %c0_3 = arith.constant 0 : index
    %c0_4 = arith.constant 0 : index
    %2 = vector.load %arg3[%c0_3, %c0_4] : memref<64x1xf32, #tpu.memory_space<vmem>>, vector<64x1xf32>
    %cst = arith.constant dense<0.000000e+00> : vector<64x8xf32>
    %3 = tpu.matmul %0, %1, %cst {dimension_numbers = #tpu.dot_dimension_numbers<[1], [1], [0], [0], [0, 0, 1, 0], [], []>} : vector<64x16xf32>, vector<8x16xf32>, vector<64x8xf32> -> vector<64x8xf32>
    %4 = arith.mulf %1, %1 : vector<8x16xf32>
    %cst_5 = arith.constant dense<0.000000e+00> : vector<8xf32>
    %5 = vector.multi_reduction <add>, %4, %cst_5 [1] : vector<8x16xf32> to vector<8xf32>
    %6 = vector.shape_cast %5 : vector<8xf32> to vector<8x1xf32>
    %7 = tpu.transpose %6, [1, 0] : vector<8x1xf32> -> vector<1x8xf32>
    %8 = vector.broadcast %2 : vector<64x1xf32> to vector<64x8xf32>
    %9 = vector.broadcast %7 : vector<1x8xf32> to vector<64x8xf32>
    %10 = arith.addf %8, %9 : vector<64x8xf32>
    %cst_6 = arith.constant 2.000000e+00 : f32
    %11 = vector.broadcast %cst_6 : f32 to vector<64x8xf32>
    %12 = arith.mulf %11, %3 : vector<64x8xf32>
    %13 = arith.subf %10, %12 : vector<64x8xf32>
    %cst_7 = arith.constant 0.000000e+00 : f32
    %14 = vector.broadcast %cst_7 : f32 to vector<64x8xf32>
    %15 = arith.maximumf %13, %14 : vector<64x8xf32>
    %cst_8 = arith.constant dense<0x7F800000> : vector<8xf32>
    %16 = vector.multi_reduction <minimumf>, %15, %cst_8 [0] : vector<64x8xf32> to vector<8xf32>
    %17 = vector.shape_cast %16 : vector<8xf32> to vector<1x8xf32>
    %18 = tpu.iota {dimensions = array<i32: 0>} : vector<64x8xi32>
    %19 = vector.broadcast %17 : vector<1x8xf32> to vector<64x8xf32>
    %20 = arith.cmpf oeq, %15, %19 : vector<64x8xf32>
    %c64_i32 = arith.constant 64 : i32
    %21 = vector.broadcast %c64_i32 : i32 to vector<64x8xi32>
    %22 = arith.select %20, %18, %21 : vector<64x8xi1>, vector<64x8xi32>
    %cst_9 = arith.constant dense<2147483647> : vector<8xi32>
    %23 = vector.multi_reduction <minsi>, %22, %cst_9 [0] : vector<64x8xi32> to vector<8xi32>
    %24 = vector.shape_cast %23 : vector<8xi32> to vector<1x8xi32>
    %25 = math.sqrt %15 : vector<64x8xf32>
    %26 = math.sqrt %17 : vector<1x8xf32>
    %27 = vector.broadcast %26 : vector<1x8xf32> to vector<64x8xf32>
    %28 = arith.subf %27, %25 : vector<64x8xf32>
    %cst_10 = arith.constant 1.000000e+00 : f32
    %29 = vector.broadcast %cst_10 : f32 to vector<64x8xf32>
    %30 = arith.mulf %28, %29 : vector<64x8xf32>
    %31 = math.exp %30 : vector<64x8xf32>
    %c0_11 = arith.constant 0 : index
    %c0_12 = arith.constant 0 : index
    %32 = vector.load %arg4[%c0_11, %c0_12] : memref<64x8xf32, #tpu.memory_space<vmem>>, vector<64x8xf32>
    tpu.vector_store %arg4[%c0_11, %c0_12], %31 {strides = array<i32>} : memref<64x8xf32, #tpu.memory_space<vmem>>, vector<64x8xf32>,
    %c0_13 = arith.constant 0 : index
    %c0_14 = arith.constant 0 : index
    %33 = vector.load %arg5[%c0_13, %c0_14] : memref<1x8xi32, #tpu.memory_space<vmem>>, vector<1x8xi32>
    tpu.vector_store %arg5[%c0_13, %c0_14], %24 {strides = array<i32>} : memref<1x8xi32, #tpu.memory_space<vmem>>, vector<1x8xi32>,
    return
  }
  func.func @transform_0(%arg0: i32) -> (i32, i32) {
    %c0_i32 = arith.constant 0 : i32
    %c0_i32_0 = arith.constant 0 : i32
    return %arg0, %c0_i32 : i32, i32
  }
  func.func @transform_1(%arg0: i32) -> (i32, i32) {
    %c0_i32 = arith.constant 0 : i32
    %c0_i32_0 = arith.constant 0 : i32
    %c0_i32_1 = arith.constant 0 : i32
    return %c0_i32, %c0_i32_0 : i32, i32
  }
  func.func @transform_2(%arg0: i32) -> (i32, i32) {
    %c0_i32 = arith.constant 0 : i32
    %c0_i32_0 = arith.constant 0 : i32
    %c0_i32_1 = arith.constant 0 : i32
    return %c0_i32, %c0_i32_0 : i32, i32
  }
  func.func @transform_3(%arg0: i32) -> (i32, i32) {
    %c0_i32 = arith.constant 0 : i32
    %c0_i32_0 = arith.constant 0 : i32
    return %c0_i32, %arg0 : i32, i32
  }
  func.func @transform_4(%arg0: i32) -> (i32, i32) {
    %c0_i32 = arith.constant 0 : i32
    %c0_i32_0 = arith.constant 0 : i32
    return %c0_i32, %arg0 : i32, i32
  }
}

module attributes {stable_mosaic.version = 11 : i64} {
  func.func @som_labelling_kernel(%arg0: i32, %arg1: memref<8x16xf32, #tpu.memory_space<vmem>>, %arg2: memref<64x16xf32, #tpu.memory_space<vmem>>, %arg3: memref<64x1xf32, #tpu.memory_space<vmem>>, %arg4: memref<64x8xf32, #tpu.memory_space<vmem>>, %arg5: memref<1x8xi32, #tpu.memory_space<vmem>>) attributes {dimension_semantics = [#tpu.dimension_semantics<parallel>], iteration_bounds = array<i64: 1>, scalar_prefetch = 0 : i64, scratch_operands = 0 : i64, tpu.core_type = #tpu.core_type<tc>, window_params = [{transform_indices = @transform_0, window_bounds = array<i64: 8, 16>}, {pipeline_mode = #tpu.pipeline_mode<synchronous>, transform_indices = @transform_1, window_bounds = array<i64: 64, 16>}, {pipeline_mode = #tpu.pipeline_mode<synchronous>, transform_indices = @transform_2, window_bounds = array<i64: 64, 1>}, {transform_indices = @transform_3, window_bounds = array<i64: 64, 8>}, {transform_indices = @transform_4, window_bounds = array<i64: 1, 8>}]} {
    %c0 = arith.constant 0 : index
    %c0_0 = arith.constant 0 : index
    %0 = vector.load %arg2[%c0, %c0_0] : memref<64x16xf32, #tpu.memory_space<vmem>>, vector<64x16xf32>
    %c0_1 = arith.constant 0 : index
    %c0_2 = arith.constant 0 : index
    %1 = vector.load %arg1[%c0_1, %c0_2] : memref<8x16xf32, #tpu.memory_space<vmem>>, vector<8x16xf32>
    %c0_3 = arith.constant 0 : index
    %c0_4 = arith.constant 0 : index
    %2 = vector.load %arg3[%c0_3, %c0_4] : memref<64x1xf32, #tpu.memory_space<vmem>>, vector<64x1xf32>
    %cst = arith.constant dense<0.000000e+00> : vector<64x8xf32>
    %3 = tpu.matmul %0, %1, %cst {dimension_numbers = #tpu.dot_dimension_numbers<[1], [1], [0], [0], [0, 0, 1, 0], [], []>} : vector<64x16xf32>, vector<8x16xf32>, vector<64x8xf32> -> vector<64x8xf32>
    %4 = arith.mulf %1, %1 : vector<8x16xf32>
    %cst_5 = arith.constant dense<0.000000e+00> : vector<8xf32>
    %5 = vector.multi_reduction <add>, %4, %cst_5 [1] : vector<8x16xf32> to vector<8xf32>
    %6 = vector.shape_cast %5 : vector<8xf32> to vector<8x1xf32>
    %7 = tpu.transpose %6, [1, 0] : vector<8x1xf32> -> vector<1x8xf32>
    %8 = vector.broadcast %2 : vector<64x1xf32> to vector<64x8xf32>
    %9 = vector.broadcast %7 : vector<1x8xf32> to vector<64x8xf32>
    %10 = arith.addf %8, %9 : vector<64x8xf32>
    %cst_6 = arith.constant 2.000000e+00 : f32
    %11 = vector.broadcast %cst_6 : f32 to vector<64x8xf32>
    %12 = arith.mulf %11, %3 : vector<64x8xf32>
    %13 = arith.subf %10, %12 : vector<64x8xf32>
    %cst_7 = arith.constant 0.000000e+00 : f32
    %14 = vector.broadcast %cst_7 : f32 to vector<64x8xf32>
    %15 = arith.maximumf %13, %14 : vector<64x8xf32>
    %cst_8 = arith.constant dense<0x7F800000> : vector<8xf32>
    %16 = vector.multi_reduction <minimumf>, %15, %cst_8 [0] : vector<64x8xf32> to vector<8xf32>
    %17 = vector.shape_cast %16 : vector<8xf32> to vector<1x8xf32>
    %18 = tpu.iota {dimensions = array<i32: 0>} : vector<64x8xi32>
    %19 = vector.broadcast %17 : vector<1x8xf32> to vector<64x8xf32>
    %20 = arith.cmpf oeq, %15, %19 : vector<64x8xf32>
    %c64_i32 = arith.constant 64 : i32
    %21 = vector.broadcast %c64_i32 : i32 to vector<64x8xi32>
    %22 = arith.select %20, %18, %21 : vector<64x8xi1>, vector<64x8xi32>
    %cst_9 = arith.constant dense<2147483647> : vector<8xi32>
    %23 = vector.multi_reduction <minsi>, %22, %cst_9 [0] : vector<64x8xi32> to vector<8xi32>
    %24 = vector.shape_cast %23 : vector<8xi32> to vector<1x8xi32>
    %25 = math.sqrt %15 : vector<64x8xf32>
    %26 = math.sqrt %17 : vector<1x8xf32>
    %27 = vector.broadcast %26 : vector<1x8xf32> to vector<64x8xf32>
    %28 = arith.subf %27, %25 : vector<64x8xf32>
    %cst_10 = arith.constant 1.000000e+00 : f32
    %29 = vector.broadcast %cst_10 : f32 to vector<64x8xf32>
    %30 = arith.mulf %28, %29 : vector<64x8xf32>
    %31 = math.exp %30 : vector<64x8xf32>
    %c0_11 = arith.constant 0 : index
    %c0_12 = arith.constant 0 : index
    %32 = vector.load %arg4[%c0_11, %c0_12] : memref<64x8xf32, #tpu.memory_space<vmem>>, vector<64x8xf32>
    tpu.vector_store %arg4[%c0_11, %c0_12], %31 {strides = array<i32>} : memref<64x8xf32, #tpu.memory_space<vmem>>, vector<64x8xf32>,
    %c0_13 = arith.constant 0 : index
    %c0_14 = arith.constant 0 : index
    %33 = vector.load %arg5[%c0_13, %c0_14] : memref<1x8xi32, #tpu.memory_space<vmem>>, vector<1x8xi32>
    tpu.vector_store %arg5[%c0_13, %c0_14], %24 {strides = array<i32>} : memref<1x8xi32, #tpu.memory_space<vmem>>, vector<1x8xi32>,
    return
  }
  func.func @transform_0(%arg0: i32) -> (i32, i32) {
    %c0_i32 = arith.constant 0 : i32
    %c0_i32_0 = arith.constant 0 : i32
    return %arg0, %c0_i32 : i32, i32
  }
  func.func @transform_1(%arg0: i32) -> (i32, i32) {
    %c0_i32 = arith.constant 0 : i32
    %c0_i32_0 = arith.constant 0 : i32
    %c0_i32_1 = arith.constant 0 : i32
    return %c0_i32, %c0_i32_0 : i32, i32
  }
  func.func @transform_2(%arg0: i32) -> (i32, i32) {
    %c0_i32 = arith.constant 0 : i32
    %c0_i32_0 = arith.constant 0 : i32
    %c0_i32_1 = arith.constant 0 : i32
    return %c0_i32, %c0_i32_0 : i32, i32
  }
  func.func @transform_3(%arg0: i32) -> (i32, i32) {
    %c0_i32 = arith.constant 0 : i32
    %c0_i32_0 = arith.constant 0 : i32
    return %c0_i32, %arg0 : i32, i32
  }
  func.func @transform_4(%arg0: i32) -> (i32, i32) {
    %c0_i32 = arith.constant 0 : i32
    %c0_i32_0 = arith.constant 0 : i32
    return %c0_i32, %arg0 : i32, i32
  }
}

</mosaic_0001>

<bundles_post_ra>
// kernel: tpu_custom_call.1
= control target key start
LH: loop header
LB: loop body
LE: loop exit
PB: predicated region body
PF: predicated region fallthrough
CT: control target
= control target key end

     0   :  { %vm34_vm0 = vcmask 130048   ;;  %v569_v4 = vmov 0   ;;  %s877_s0 = inlined_call_operand.vmem [shape: f32[8,16], index: 0, kind: input, shape index: {}]   ;;  %s878_s1 = inlined_call_operand.vmem [shape: f32[64,16], index: 1, kind: input, shape index: {}]   ;;  %s879_s2 = inlined_call_operand.vmem [shape: f32[64,1], index: 2, kind: input, shape index: {}]   ;;  %s880_s3 = inlined_call_operand.vmem [shape: f32[64,8], index: 3, kind: output, shape index: {0}]   ;;  %s881_s4 = inlined_call_operand.hbm [shape: s32[1,8], index: 4, kind: output, shape index: {1}]  }
   0x1   :  { %v25_v0 = vld [vmem:[%s877_s0] sm:$0xff]  ;;  %v27_v1 = vld [vmem:[%s879_s2 + $0x8] sm:$0xff]  ;;  %510 = vset.pattern.permute.xlu1 %v569_v4  ;;  %v19_v9 = vld [vmem:[%s878_s1 + $0x10] sm:$0xff] }
   0x2   :  { %v167_v2 = vmul.f32 %v25_v0, %v25_v0  ;;  %490 = vmatprep.subr.msk.mxu0 %vm34_vm0, %v25_v0  ;;  %504 = vmatprep.subr.msk.mxu1 %vm34_vm0, %v25_v0  ;;  %v17_v3 = vld [vmem:[%s878_s1] sm:$0xff]  ;;  %v18_v6 = vld [vmem:[%s878_s1 + $0x8] sm:$0xff]  ;;  %v28_v10 = vld [vmem:[%s879_s2 + $0x10] sm:$0xff] }
   0x3   :  { %491 = vmatpush3.xpose.msk.msra.mxu0 %vm34_vm0, %v25_v0  ;;  %v21_v5 = vld [vmem:[%s878_s1 + $0x20] sm:$0xff]  ;;  %505 = vmatpush3.xpose.msk.msra.mxu1 %vm34_vm0, %v25_v0  ;;  %v22_v8 = vld [vmem:[%s878_s1 + $0x28] sm:$0xff]  ;;  %v23_v11 = vld [vmem:[%s878_s1 + $0x30] sm:$0xff] }
   0x4   :  { %v168_v7 = vsel %vm34_vm0, %v167_v2, 0.0  ;;  %210 = vperm.xlu1 %510, %v27_v1   ;;  %492 = vmatprep.mubr.msk.f32.mxu0 %vm34_vm0, %v17_v3 }
   0x5   :  { %169 = vadd.xlane.f32.xlu0 %v168_v7  ;;  %498 = vmatprep.mubr.msk.f32.mxu1 %vm34_vm0, %v21_v5 }
   0x6   :  { %493 = vmatmul.mubr.msk.f32.vlgmr.msra.gmra.mrb[0].mxu0 %vm34_vm0, %v18_v6 }
   0x7   :  { %10 = vsyncpa [#allocation3], 0  ;;  %499 = vmatmul.mubr.msk.f32.vlgmr.msra.gmra.mrb[0].mxu1 %vm34_vm0, %v22_v8  ;;  %495 = vmatprep.mubr.msk.f32.mxu0 %vm34_vm0, %v19_v9  ;;  %v20_v12 = vld [vmem:[%s878_s1 + $0x18] sm:$0xff]  ;;  %v30_v15 = vld [vmem:[%s879_s2 + $0x20] sm:$0xff]  ;;  %v243_v34 = vlaneseq  ;;  %vm279_vm1 = vcmask 64512  }
   0x8   :  { %215 = vperm.xlu1 %510, %v28_v10   ;;  %501 = vmatprep.mubr.msk.f32.mxu1 %vm34_vm0, %v23_v11  ;;  %v24_v13 = vld [vmem:[%s878_s1 + $0x38] sm:$0xff]  ;;  %v31_v16 = vld [vmem:[%s879_s2 + $0x28] sm:$0xff]  ;;  %v32_v17 = vld [vmem:[%s879_s2 + $0x30] sm:$0xff] }
   0x9   :  { %v29_v14 = vld [vmem:[%s879_s2 + $0x18] sm:$0xff]  ;;  %509 = vset.pattern.permute.xlu0 %v569_v4  ;;  %v26_v18 = vld [vmem:[%s879_s2] sm:$0xff]  ;;  %v660_v36 = vshrl.u32 %v243_v34, 7 }
   0xa   :  { %496 = vmatmul.mubr.msk.f32.gmra.mrb[2].mxu0 %vm34_vm0, %v20_v12  ;;  %v33_v19 = vld [vmem:[%s879_s2 + $0x38] sm:$0xff]  ;;  %s570_s2 = smov [#allocation2]  }
   0xb   :  { %502 = vmatmul.mubr.msk.f32.gmra.mrb[2].mxu1 %vm34_vm0, %v24_v13  ;;  %v245_v38 = vsub.s32 0, %v660_v36  ;;  %v708_v34 = vadd.s32 40, %v660_v36  ;;  %s462_s21 = sshll.u32 %s570_s2, 4  ;;  %s463_s21 = int_to_ptr.vmem [resolvable:$true] %s462_s21 }
   0xc   :  { %220 = vperm.xlu1 %510, %v29_v14   ;;  %s545_s0 = scalar_lea.vmem %s463_s21, 16  ;;  %s549_s22 = scalar_lea.vmem %s463_s21, 32 }
   0xd   :  { %p546_p0 = scmp.ne.s32.totalorder %s463_s21, %s545_s0  ;;  %p550_p1 = scmp.lt.s32.totalorder %s463_s21, %s463_s21 }
   0xe   :  { %p551_p2 = scmp.lt.s32.totalorder %s549_s22, %s545_s0 }
  0x10   :  { %225 = vperm.xlu1 %510, %v30_v15   ;;  %p552_p3 = por %p551_p2, %p550_p1 }
  0x12   :  { %p553_p4 = pnand %p552_p3, %p546_p0 }
  0x14   :  { %230 = vperm.xlu1 %510, %v31_v16  }
  0x18   :  { %235 = vperm.xlu1 %510, %v32_v17  }
  0x1b   :  { %205 = vperm.xlu0 %509, %v26_v18  }
  0x1c   :  { %240 = vperm.xlu1 %510, %v33_v19  }
  0x83   :  { %v211_v29 = vpop.permute.xlu1 %210 }
  0x87   :  { %v216_v30 = vpop.permute.xlu1 %215 }
  0x8b   :  { %v221_v31 = vpop.permute.xlu1 %220 }
  0x8f   :  { %v226_v32 = vpop.permute.xlu1 %225 }
  0x92   :  { %v170_v20 = vpop.xlane.xlu0 %169 }
  0x93   :  { %171 = vxpose.xlu1.b32.start.end [1/1] (short) (narrow) %v170_v20, 8  ;;  %v231_v33 = vpop.permute.xlu1 %230 }
  0x97   :  { %v236_v35 = vpop.permute.xlu1 %235 }
  0x9a   :  { %v206_v44 = vpop.permute.xlu0 %205 }
  0x9b   :  { %v241_v37 = vpop.permute.xlu1 %240 }
  0xd9   :  { %v494_v21 = vpop.f32.mrb[0].mxu0 }
  0xda   :  { %v500_v22 = vpop.f32.mrb[0].mxu1  ;;  %v128_v23 = vpop.f32.mrb[1].mxu0  ;;  %v256_v52 = vmul.f32 2.0, %v494_v21 }
  0xdb   :  { %v148_v24 = vpop.f32.mrb[1].mxu1  ;;  %v260_v59 = vmul.f32 2.0, %v500_v22  ;;  %v255_v60 = vmul.f32 2.0, %v128_v23 }
  0xdc   :  { %v259_v56 = vmul.f32 2.0, %v148_v24 }
  0xdd   :  { %v497_v25 = vpop.f32.mrb[2].mxu0 }
  0xde   :  { %v503_v26 = vpop.f32.mrb[2].mxu1  ;;  %v138_v27 = vpop.f32.mrb[3].mxu0  ;;  %v258_v41 = vmul.f32 2.0, %v497_v25 }
  0xdf   :  { %v158_v28 = vpop.f32.mrb[3].mxu1  ;;  %v262_v42 = vmul.f32 2.0, %v503_v26  ;;  %v257_v43 = vmul.f32 2.0, %v138_v27 }
  0xe0   :  { %v261_v47 = vmul.f32 2.0, %v158_v28 }
 0x113   :  { %v187_v39 = vpop.trf.xlu1 }
 0x114   :  { %v246_v40 = vrot.slane %v187_v39, %v245_v38 }
 0x116   :  { %v248_v45 = vadd.f32 %v246_v40, %v211_v29  ;;  %v250_v46 = vadd.f32 %v246_v40, %v221_v31  ;;  %v251_v48 = vadd.f32 %v246_v40, %v226_v32  ;;  %v254_v49 = vadd.f32 %v246_v40, %v241_v37 }
 0x117   :  { %v249_v50 = vadd.f32 %v246_v40, %v216_v30  ;;  %v253_v51 = vadd.f32 %v246_v40, %v236_v35  ;;  %v252_v53 = vadd.f32 %v246_v40, %v231_v33  ;;  %v247_v55 = vadd.f32 %v246_v40, %v206_v44 }
 0x118   :  { %v266_v54 = vsub.f32 %v250_v46, %v258_v41  ;;  %v270_v57 = vsub.f32 %v254_v49, %v262_v42  ;;  %v264_v61 = vsub.f32 %v248_v45, %v256_v52  ;;  %v267_v62 = vsub.f32 %v251_v48, %v259_v56 }
 0x119   :  { %v265_v58 = vsub.f32 %v249_v50, %v257_v43  ;;  %v269_v0 = vsub.f32 %v253_v51, %v261_v47  ;;  %v268_v1 = vsub.f32 %v252_v53, %v260_v59  ;;  %v263_v3 = vsub.f32 %v247_v55, %v255_v60 }
 0x11a   :  { %v663_v63 = vmax.f32 %v266_v54, 0.0  ;;  %v665_v2 = vmax.f32 %v270_v57, 0.0  ;;  %v669_v5 = vmax.f32 %v264_v61, 0.0  ;;  %v671_v6 = vmax.f32 %v267_v62, 0.0 }
 0x11b   :  { %v667_v4 = vmax.f32 %v265_v58, 0.0  ;;  %v675_v8 = vmax.f32 %v269_v0, 0.0  ;;  %v677_v9 = vmax.f32 %v268_v1, 0.0  ;;  %v681_v11 = vmax.f32 %v263_v3, 0.0 }
 0x11c   :  { %v283_v7 = vsel %vm279_vm1, %v663_v63, inf  ;;  %v290_v10 = vsel %vm279_vm1, %v665_v2, inf  ;;  %511 = vrsqrt.f32 %v669_v5  ;;  %v281_v17 = vsel %vm279_vm1, %v669_v5, inf }
 0x11d   :  { %v291_v12 = vmin.f32 %v283_v7, %v290_v10  ;;  %v282_v13 = vsel %vm279_vm1, %v667_v4, inf  ;;  %513 = vrsqrt.f32 %v671_v6  ;;  %v288_v14 = vsel %vm279_vm1, %v675_v8, inf }
 0x11e   :  { %515 = vrsqrt.f32 %v677_v9  ;;  %v289_v15 = vmin.f32 %v282_v13, %v288_v14  ;;  %v280_v16 = vsel %vm279_vm1, %v681_v11, inf  ;;  %v284_v18 = vsel %vm279_vm1, %v671_v6, inf }
 0x11f   :  { %v286_v19 = vsel %vm279_vm1, %v677_v9, inf  ;;  %v285_v21 = vmin.f32 %v280_v16, %v284_v18  ;;  %517 = vrsqrt.f32 %v663_v63  ;;  %v303_v30 = vadd.s32 8, %v660_v36 }
 0x120   :  { %v293_v20 = vmin.f32 %v289_v15, %v291_v12  ;;  %v287_v22 = vmin.f32 %v281_v17, %v286_v19  ;;  %519 = vrsqrt.f32 %v665_v2  ;;  %v304_v31 = vadd.s32 16, %v660_v36 }
 0x121   :  { %521 = vrsqrt.f32 %v667_v4  ;;  %v305_v32 = vadd.s32 24, %v660_v36  ;;  %v705_v33 = vadd.s32 32, %v660_v36  ;;  %v711_v35 = vadd.s32 48, %v660_v36 }
 0x122   :  { %v292_v23 = vmin.f32 %v285_v21, %v287_v22  ;;  %523 = vrsqrt.f32 %v675_v8  ;;  %vm366_vm2 = vcmp.eq.f32.partialorder %v669_v5, inf  ;;  %v309_v42 = vadd.s32 56, %v660_v36 }
 0x123   :  { %525 = vrsqrt.f32 %v681_v11  ;;  %vm368_vm3 = vcmp.eq.f32.partialorder %v669_v5, 0.0  ;;  %v369_v43 = vand.u32 2147483648, %v669_v5  ;;  %vm387_vm4 = vcmp.eq.f32.partialorder %v671_v6, inf }
 0x124   :  { %v294_v24 = vmin.f32 %v292_v23, %v293_v20  ;;  %vm389_vm5 = vcmp.eq.f32.partialorder %v671_v6, 0.0  ;;  %v390_v45 = vand.u32 2147483648, %v671_v6  ;;  %vm394_vm6 = vcmp.eq.f32.partialorder %v677_v9, inf }
 0x125   :  { %vm396_vm7 = vcmp.eq.f32.partialorder %v677_v9, 0.0  ;;  %v397_v53 = vand.u32 2147483648, %v677_v9  ;;  %vm380_vm8 = vcmp.eq.f32.partialorder %v663_v63, inf  ;;  %v383_v54 = vand.u32 2147483648, %v663_v63 }
 0x126   :  { %v512_v25 = vpop.eup %511  ;;  %v295_v26 = vrot.slane %v294_v24, 4  ;;  %v411_v55 = vand.u32 2147483648, %v665_v2  ;;  %v376_v56 = vand.u32 2147483648, %v667_v4  ;;  %v404_v57 = vand.u32 2147483648, %v675_v8 }
 0x127   :  { %v514_v27 = vpop.eup %513  ;;  %v365_v37 = vmul.f32 %v512_v25, %v669_v5  ;;  %v362_v62 = vand.u32 2147483648, %v681_v11  ;;  %vm408_vm9 = vcmp.eq.f32.partialorder %v665_v2, inf  ;;  %vm382_vm10 = vcmp.eq.f32.partialorder %v663_v63, 0.0 }
 0x128   :  { %v516_v28 = vpop.eup %515  ;;  %v296_v29 = vmin.f32 %v294_v24, %v295_v26  ;;  %v386_v38 = vmul.f32 %v514_v27, %v671_v6  ;;  %vm373_vm11 = vcmp.eq.f32.partialorder %v667_v4, inf  ;;  %vm401_vm0 = vcmp.eq.f32.partialorder %v675_v8, inf }
 0x129   :  { %v518_v40 = vpop.eup %517  ;;  %v393_v41 = vmul.f32 %v516_v28, %v677_v9  ;;  %v367_v47 = vsel %vm366_vm2, %v669_v5, %v365_v37  ;;  %vm403_vm2 = vcmp.eq.f32.partialorder %v675_v8, 0.0 }
 0x12a   :  { %v297_v39 = vrot.slane %v296_v29, 2  ;;  %v520_v46 = vpop.eup %519  ;;  %v388_v48 = vsel %vm387_vm4, %v671_v6, %v386_v38  ;;  %v379_v49 = vmul.f32 %v518_v40, %v663_v63  ;;  %v741_v59 = vsel %vm368_vm3, %v369_v43, %v367_v47 }
 0x12b   :  { %v522_v51 = vpop.eup %521  ;;  %v395_v52 = vsel %vm394_vm6, %v677_v9, %v393_v41  ;;  %v745_v60 = vsel %vm389_vm5, %v390_v45, %v388_v48  ;;  %v407_v61 = vmul.f32 %v520_v46, %v665_v2 }
 0x12c   :  { %v298_v44 = vmin.f32 %v296_v29, %v297_v39  ;;  %v751_v0 = vsel %vm396_vm7, %v397_v53, %v395_v52  ;;  %v381_v1 = vsel %vm380_vm8, %v663_v63, %v379_v49  ;;  %v372_v3 = vmul.f32 %v522_v51, %v667_v4  ;;  %v524_v7 = vpop.eup %523 }
 0x12d   :  { %vm375_vm8 = vcmp.eq.f32.partialorder %v667_v4, 0.0  ;;  %v400_v17 = vmul.f32 %v524_v7, %v675_v8  ;;  %vm361_vm7 = vcmp.eq.f32.partialorder %v681_v11, 0.0  ;;  %v409_v28 = vsel %vm408_vm9, %v665_v2, %v407_v61 }
 0x12e   :  { %v299_v50 = vrot.slane %v298_v44, 1  ;;  %vm882_vm9 = vcmp.eq.f32.partialorder %v681_v11, inf }
 0x130   :  { %v737_v58 = vmin.f32 %v298_v44, %v299_v50 }
 0x132   :  { %527 = vrsqrt.f32 %v737_v58  ;;  %vm310_vm12 = vcmp.eq.f32.partialorder %v681_v11, %v737_v58  ;;  %vm311_vm13 = vcmp.eq.f32.partialorder %v669_v5, %v737_v58  ;;  %vm312_vm14 = vcmp.eq.f32.partialorder %v667_v4, %v737_v58  ;;  %v526_v5 = vpop.eup %525 }
 0x133   :  { %vm313_vm15 = vcmp.eq.f32.partialorder %v663_v63, %v737_v58  ;;  %vm314_vm3 = vcmp.eq.f32.partialorder %v671_v6, %v737_v58  ;;  %vm315_vm4 = vcmp.eq.f32.partialorder %v677_v9, %v737_v58  ;;  %vm316_vm5 = vcmp.eq.f32.partialorder %v675_v8, %v737_v58 }
 0x134   :  { %vm317_vm6 = vcmp.eq.f32.partialorder %v665_v2, %v737_v58  ;;  %v318_v10 = vsel %vm310_vm12, %v660_v36, 64  ;;  %v319_v12 = vsel %vm311_vm13, %v303_v30, 64  ;;  %v320_v13 = vsel %vm312_vm14, %v304_v31, 64 }
 0x135   :  { %v321_v14 = vsel %vm313_vm15, %v305_v32, 64  ;;  %v322_v6 = vsel %vm314_vm3, %v705_v33, 64  ;;  %v323_v9 = vsel %vm315_vm4, %v708_v34, 64  ;;  %v324_v15 = vsel %vm316_vm5, %v711_v35, 64 }
 0x136   :  { %v325_v16 = vsel %vm317_vm6, %v309_v42, 64  ;;  %v326_v36 = vsel %vm279_vm1, %v318_v10, 2147483647  ;;  %v327_v18 = vsel %vm279_vm1, %v319_v12, 2147483647  ;;  %v358_v20 = vmul.f32 %v526_v5, %v681_v11 }
 0x137   :  { %v328_v19 = vsel %vm279_vm1, %v320_v13, 2147483647  ;;  %v329_v21 = vsel %vm279_vm1, %v321_v14, 2147483647  ;;  %v330_v22 = vsel %vm279_vm1, %v322_v6, 2147483647  ;;  %v384_v32 = vsel %vm382_vm10, %v383_v54, %v381_v1 }
 0x138   :  { %v333_v23 = vsel %vm279_vm1, %v323_v9, 2147483647  ;;  %vm331_vm12 = vcmp.lt.s32.totalorder %v326_v36, %v330_v22  ;;  %v336_v24 = vsel %vm279_vm1, %v324_v15, 2147483647  ;;  %v339_v25 = vsel %vm279_vm1, %v325_v16, 2147483647 }
 0x139   :  { %vm334_vm13 = vcmp.lt.s32.totalorder %v327_v18, %v333_v23  ;;  %v332_v26 = vsel %vm331_vm12, %v326_v36, %v330_v22  ;;  %vm337_vm14 = vcmp.lt.s32.totalorder %v328_v19, %v336_v24  ;;  %vm340_vm15 = vcmp.lt.s32.totalorder %v329_v21, %v339_v25 }
 0x13a   :  { %v335_v27 = vsel %vm334_vm13, %v327_v18, %v333_v23  ;;  %v338_v29 = vsel %vm337_vm14, %v328_v19, %v336_v24  ;;  %v341_v30 = vsel %vm340_vm15, %v329_v21, %v339_v25  ;;  %v374_v33 = vsel %vm373_vm11, %v667_v4, %v372_v3 }
 0x13b   :  { %vm342_vm3 = vcmp.lt.s32.totalorder %v332_v26, %v335_v27  ;;  %vm344_vm4 = vcmp.lt.s32.totalorder %v338_v29, %v341_v30  ;;  %v402_v35 = vsel %vm401_vm0, %v675_v8, %v400_v17  ;;  %v360_v37 = vsel %vm882_vm9, %v681_v11, %v358_v20 }
 0x13c   :  { %v528_v31 = vpop.eup %527  ;;  %v343_v34 = vsel %vm342_vm3, %v332_v26, %v335_v27  ;;  %v345_v39 = vsel %vm344_vm4, %v338_v29, %v341_v30  ;;  %vm883_vm10 = vcmp.eq.f32.partialorder %v665_v2, 0.0  ;;  %vm415_vm11 = vcmp.eq.f32.partialorder %v737_v58, inf }
 0x13d   :  { %v414_v38 = vmul.f32 %v528_v31, %v737_v58  ;;  %v412_v63 = vsel %vm883_vm10, %v411_v55, %v409_v28  ;;  %v418_v40 = vand.u32 2147483648, %v737_v58  ;;  %vm346_vm5 = vcmp.lt.s32.totalorder %v343_v34, %v345_v39 }
 0x13e   :  { %v377_v41 = vsel %vm375_vm8, %v376_v56, %v374_v33  ;;  %vm417_vm0 = vcmp.eq.f32.partialorder %v737_v58, 0.0  ;;  %v347_v43 = vsel %vm346_vm5, %v343_v34, %v345_v39  ;;  %v405_v2 = vsel %vm403_vm2, %v404_v57, %v402_v35 }
 0x13f   :  { %v416_v42 = vsel %vm415_vm11, %v737_v58, %v414_v38  ;;  %v363_v44 = vsel %vm361_vm7, %v362_v62, %v360_v37  ;;  %v348_v46 = vrot.slane %v347_v43, 4  ;;  %vm452_vm7 = vcmask 57344  }
 0x140   :  { %v419_v45 = vsel %vm417_vm0, %v418_v40, %v416_v42 }
 0x141   :  { %v420_v47 = vsub.f32 %v419_v45, %v363_v44  ;;  %v421_v4 = vsub.f32 %v419_v45, %v741_v59  ;;  %v422_v48 = vsub.f32 %v419_v45, %v377_v41  ;;  %v423_v49 = vsub.f32 %v419_v45, %v384_v32 }
 0x142   :  { %v424_v50 = vsub.f32 %v419_v45, %v745_v60  ;;  %v425_v51 = vsub.f32 %v419_v45, %v751_v0  ;;  %v426_v52 = vsub.f32 %v419_v45, %v405_v2  ;;  %v427_v53 = vsub.f32 %v419_v45, %v412_v63 }
 0x143   :  { %v428_v8 = vmul.f32 1.442695, %v420_v47  ;;  %v430_v54 = vmul.f32 1.442695, %v421_v4  ;;  %v432_v55 = vmul.f32 1.442695, %v422_v48  ;;  %vm349_vm2 = vcmp.lt.s32.totalorder %v347_v43, %v348_v46 }
 0x144   :  { %v434_v56 = vmul.f32 1.442695, %v423_v49  ;;  %v350_v11 = vsel %vm349_vm2, %v347_v43, %v348_v46  ;;  %v436_v57 = vmul.f32 1.442695, %v424_v50  ;;  %v438_v61 = vmul.f32 1.442695, %v425_v51 }
 0x145   :  { %529 = vpow2.f32 %v428_v8  ;;  %v351_v58 = vrot.slane %v350_v11, 2  ;;  %v440_v59 = vmul.f32 1.442695, %v426_v52  ;;  %v442_v60 = vmul.f32 1.442695, %v427_v53 }
 0x146   :  { %531 = vpow2.f32 %v430_v54 }
 0x147   :  { %533 = vpow2.f32 %v432_v55  ;;  %vm352_vm6 = vcmp.lt.s32.totalorder %v350_v11, %v351_v58 }
 0x148   :  { %535 = vpow2.f32 %v434_v56  ;;  %v353_v62 = vsel %vm352_vm6, %v350_v11, %v351_v58 }
 0x149   :  { %537 = vpow2.f32 %v436_v57  ;;  %v354_v0 = vrot.slane %v353_v62, 1 }
 0x14a   :  { %539 = vpow2.f32 %v438_v61 }
 0x14b   :  { %541 = vpow2.f32 %v440_v59  ;;  %vm355_vm8 = vcmp.lt.s32.totalorder %v353_v62, %v354_v0 }
 0x14c   :  { %543 = vpow2.f32 %v442_v60  ;;  %v356_v1 = vsel %vm355_vm8, %v353_v62, %v354_v0 }
 0x14d   :  { %453 = vst.msk [vmem:[#allocation2] sm:$0x1] %vm452_vm7, %v356_v1 }
 0x14e   :  { %556 = shalt.err (!%p553_p4)
}
 0x14f   :  { %s557_s25 = scalar_lea.hbm %s881_s4, 16 }
 0x150   :  { %p558_p5 = scmp.ne.s32.totalorder %s881_s4, %s557_s25  ;;  %p561_p6 = scmp.lt.u32.totalorder %s557_s25, %s881_s4 }
 0x152   :  { %p563_p7 = pnand %p561_p6, %p558_p5 }
 0x154   :  { %566 = shalt.err (!%p563_p7)
}
 0x155   :  { %465 = dma.vmem_to_hbm [thread:$0]  %s463_s21, 16, %s881_s4, [#allocation3]   ;;  %v530_v3 = vpop.eup %529 }
 0x156   :  { %v532_v7 = vpop.eup %531  ;;  %444 = vst.msk [vmem:[%s880_s3] sm:$0xff] %vm279_vm1, %v530_v3 }
 0x157   :  { %v534_v5 = vpop.eup %533  ;;  %445 = vst.msk [vmem:[%s880_s3 + $0x8] sm:$0xff] %vm279_vm1, %v532_v7 }
 0x158   :  { %v536_v10 = vpop.eup %535  ;;  %446 = vst.msk [vmem:[%s880_s3 + $0x10] sm:$0xff] %vm279_vm1, %v534_v5 }
 0x159   :  { %v538_v12 = vpop.eup %537  ;;  %447 = vst.msk [vmem:[%s880_s3 + $0x18] sm:$0xff] %vm279_vm1, %v536_v10 }
 0x15a   :  { %v540_v13 = vpop.eup %539  ;;  %448 = vst.msk [vmem:[%s880_s3 + $0x20] sm:$0xff] %vm279_vm1, %v538_v12 }
 0x15b   :  { %v542_v14 = vpop.eup %541  ;;  %449 = vst.msk [vmem:[%s880_s3 + $0x28] sm:$0xff] %vm279_vm1, %v540_v13 }
 0x15c   :  { %v544_v6 = vpop.eup %543  ;;  %450 = vst.msk [vmem:[%s880_s3 + $0x30] sm:$0xff] %vm279_vm1, %v542_v14 }
 0x15d   :  { %451 = vst.msk [vmem:[%s880_s3 + $0x38] sm:$0xff] %vm279_vm1, %v544_v6 }
 0x15e   :  { %567 = dma.done.wait [#allocation3], 16  }
 0x15f   :  { %568 = vsyncadd [#allocation3], 4294967280 }
 0x160   :  { %471 = vsyncpa [#allocation3], 1 }

// kernel: tpu_custom_call.1
= control target key start
LH: loop header
LB: loop body
LE: loop exit
PB: predicated region body
PF: predicated region fallthrough
CT: control target
= control target key end

     0   :  { %vm34_vm0 = vcmask 130048   ;;  %v569_v4 = vmov 0   ;;  %s877_s0 = inlined_call_operand.vmem [shape: f32[8,16], index: 0, kind: input, shape index: {}]   ;;  %s878_s1 = inlined_call_operand.vmem [shape: f32[64,16], index: 1, kind: input, shape index: {}]   ;;  %s879_s2 = inlined_call_operand.vmem [shape: f32[64,1], index: 2, kind: input, shape index: {}]   ;;  %s880_s3 = inlined_call_operand.vmem [shape: f32[64,8], index: 3, kind: output, shape index: {0}]   ;;  %s881_s4 = inlined_call_operand.hbm [shape: s32[1,8], index: 4, kind: output, shape index: {1}]  }
   0x1   :  { %v25_v0 = vld [vmem:[%s877_s0] sm:$0xff]  ;;  %v27_v1 = vld [vmem:[%s879_s2 + $0x8] sm:$0xff]  ;;  %510 = vset.pattern.permute.xlu1 %v569_v4  ;;  %v19_v9 = vld [vmem:[%s878_s1 + $0x10] sm:$0xff] }
   0x2   :  { %v167_v2 = vmul.f32 %v25_v0, %v25_v0  ;;  %490 = vmatprep.subr.msk.mxu0 %vm34_vm0, %v25_v0  ;;  %504 = vmatprep.subr.msk.mxu1 %vm34_vm0, %v25_v0  ;;  %v17_v3 = vld [vmem:[%s878_s1] sm:$0xff]  ;;  %v18_v6 = vld [vmem:[%s878_s1 + $0x8] sm:$0xff]  ;;  %v28_v10 = vld [vmem:[%s879_s2 + $0x10] sm:$0xff] }
   0x3   :  { %491 = vmatpush3.xpose.msk.msra.mxu0 %vm34_vm0, %v25_v0  ;;  %v21_v5 = vld [vmem:[%s878_s1 + $0x20] sm:$0xff]  ;;  %505 = vmatpush3.xpose.msk.msra.mxu1 %vm34_vm0, %v25_v0  ;;  %v22_v8 = vld [vmem:[%s878_s1 + $0x28] sm:$0xff]  ;;  %v23_v11 = vld [vmem:[%s878_s1 + $0x30] sm:$0xff] }
   0x4   :  { %v168_v7 = vsel %vm34_vm0, %v167_v2, 0.0  ;;  %210 = vperm.xlu1 %510, %v27_v1   ;;  %492 = vmatprep.mubr.msk.f32.mxu0 %vm34_vm0, %v17_v3 }
   0x5   :  { %169 = vadd.xlane.f32.xlu0 %v168_v7  ;;  %498 = vmatprep.mubr.msk.f32.mxu1 %vm34_vm0, %v21_v5 }
   0x6   :  { %493 = vmatmul.mubr.msk.f32.vlgmr.msra.gmra.mrb[0].mxu0 %vm34_vm0, %v18_v6 }
   0x7   :  { %10 = vsyncpa [#allocation3], 0  ;;  %499 = vmatmul.mubr.msk.f32.vlgmr.msra.gmra.mrb[0].mxu1 %vm34_vm0, %v22_v8  ;;  %495 = vmatprep.mubr.msk.f32.mxu0 %vm34_vm0, %v19_v9  ;;  %v20_v12 = vld [vmem:[%s878_s1 + $0x18] sm:$0xff]  ;;  %v30_v15 = vld [vmem:[%s879_s2 + $0x20] sm:$0xff]  ;;  %v243_v34 = vlaneseq  ;;  %vm279_vm1 = vcmask 64512  }
   0x8   :  { %215 = vperm.xlu1 %510, %v28_v10   ;;  %501 = vmatprep.mubr.msk.f32.mxu1 %vm34_vm0, %v23_v11  ;;  %v24_v13 = vld [vmem:[%s878_s1 + $0x38] sm:$0xff]  ;;  %v31_v16 = vld [vmem:[%s879_s2 + $0x28] sm:$0xff]  ;;  %v32_v17 = vld [vmem:[%s879_s2 + $0x30] sm:$0xff] }
   0x9   :  { %v29_v14 = vld [vmem:[%s879_s2 + $0x18] sm:$0xff]  ;;  %509 = vset.pattern.permute.xlu0 %v569_v4  ;;  %v26_v18 = vld [vmem:[%s879_s2] sm:$0xff]  ;;  %v660_v36 = vshrl.u32 %v243_v34, 7 }
   0xa   :  { %496 = vmatmul.mubr.msk.f32.gmra.mrb[2].mxu0 %vm34_vm0, %v20_v12  ;;  %v33_v19 = vld [vmem:[%s879_s2 + $0x38] sm:$0xff]  ;;  %s570_s2 = smov [#allocation2]  }
   0xb   :  { %502 = vmatmul.mubr.msk.f32.gmra.mrb[2].mxu1 %vm34_vm0, %v24_v13  ;;  %v245_v38 = vsub.s32 0, %v660_v36  ;;  %v708_v34 = vadd.s32 40, %v660_v36  ;;  %s462_s21 = sshll.u32 %s570_s2, 4  ;;  %s463_s21 = int_to_ptr.vmem [resolvable:$true] %s462_s21 }
   0xc   :  { %220 = vperm.xlu1 %510, %v29_v14   ;;  %s545_s0 = scalar_lea.vmem %s463_s21, 16  ;;  %s549_s22 = scalar_lea.vmem %s463_s21, 32 }
   0xd   :  { %p546_p0 = scmp.ne.s32.totalorder %s463_s21, %s545_s0  ;;  %p550_p1 = scmp.lt.s32.totalorder %s463_s21, %s463_s21 }
   0xe   :  { %p551_p2 = scmp.lt.s32.totalorder %s549_s22, %s545_s0 }
  0x10   :  { %225 = vperm.xlu1 %510, %v30_v15   ;;  %p552_p3 = por %p551_p2, %p550_p1 }
  0x12   :  { %p553_p4 = pnand %p552_p3, %p546_p0 }
  0x14   :  { %230 = vperm.xlu1 %510, %v31_v16  }
  0x18   :  { %235 = vperm.xlu1 %510, %v32_v17  }
  0x1b   :  { %205 = vperm.xlu0 %509, %v26_v18  }
  0x1c   :  { %240 = vperm.xlu1 %510, %v33_v19  }
  0x83   :  { %v211_v29 = vpop.permute.xlu1 %210 }
  0x87   :  { %v216_v30 = vpop.permute.xlu1 %215 }
  0x8b   :  { %v221_v31 = vpop.permute.xlu1 %220 }
  0x8f   :  { %v226_v32 = vpop.permute.xlu1 %225 }
  0x92   :  { %v170_v20 = vpop.xlane.xlu0 %169 }
  0x93   :  { %171 = vxpose.xlu1.b32.start.end [1/1] (short) (narrow) %v170_v20, 8  ;;  %v231_v33 = vpop.permute.xlu1 %230 }
  0x97   :  { %v236_v35 = vpop.permute.xlu1 %235 }
  0x9a   :  { %v206_v44 = vpop.permute.xlu0 %205 }
  0x9b   :  { %v241_v37 = vpop.permute.xlu1 %240 }
  0xd9   :  { %v494_v21 = vpop.f32.mrb[0].mxu0 }
  0xda   :  { %v500_v22 = vpop.f32.mrb[0].mxu1  ;;  %v128_v23 = vpop.f32.mrb[1].mxu0  ;;  %v256_v52 = vmul.f32 2.0, %v494_v21 }
  0xdb   :  { %v148_v24 = vpop.f32.mrb[1].mxu1  ;;  %v260_v59 = vmul.f32 2.0, %v500_v22  ;;  %v255_v60 = vmul.f32 2.0, %v128_v23 }
  0xdc   :  { %v259_v56 = vmul.f32 2.0, %v148_v24 }
  0xdd   :  { %v497_v25 = vpop.f32.mrb[2].mxu0 }
  0xde   :  { %v503_v26 = vpop.f32.mrb[2].mxu1  ;;  %v138_v27 = vpop.f32.mrb[3].mxu0  ;;  %v258_v41 = vmul.f32 2.0, %v497_v25 }
  0xdf   :  { %v158_v28 = vpop.f32.mrb[3].mxu1  ;;  %v262_v42 = vmul.f32 2.0, %v503_v26  ;;  %v257_v43 = vmul.f32 2.0, %v138_v27 }
  0xe0   :  { %v261_v47 = vmul.f32 2.0, %v158_v28 }
 0x113   :  { %v187_v39 = vpop.trf.xlu1 }
 0x114   :  { %v246_v40 = vrot.slane %v187_v39, %v245_v38 }
 0x116   :  { %v248_v45 = vadd.f32 %v246_v40, %v211_v29  ;;  %v250_v46 = vadd.f32 %v246_v40, %v221_v31  ;;  %v251_v48 = vadd.f32 %v246_v40, %v226_v32  ;;  %v254_v49 = vadd.f32 %v246_v40, %v241_v37 }
 0x117   :  { %v249_v50 = vadd.f32 %v246_v40, %v216_v30  ;;  %v253_v51 = vadd.f32 %v246_v40, %v236_v35  ;;  %v252_v53 = vadd.f32 %v246_v40, %v231_v33  ;;  %v247_v55 = vadd.f32 %v246_v40, %v206_v44 }
 0x118   :  { %v266_v54 = vsub.f32 %v250_v46, %v258_v41  ;;  %v270_v57 = vsub.f32 %v254_v49, %v262_v42  ;;  %v264_v61 = vsub.f32 %v248_v45, %v256_v52  ;;  %v267_v62 = vsub.f32 %v251_v48, %v259_v56 }
 0x119   :  { %v265_v58 = vsub.f32 %v249_v50, %v257_v43  ;;  %v269_v0 = vsub.f32 %v253_v51, %v261_v47  ;;  %v268_v1 = vsub.f32 %v252_v53, %v260_v59  ;;  %v263_v3 = vsub.f32 %v247_v55, %v255_v60 }
 0x11a   :  { %v663_v63 = vmax.f32 %v266_v54, 0.0  ;;  %v665_v2 = vmax.f32 %v270_v57, 0.0  ;;  %v669_v5 = vmax.f32 %v264_v61, 0.0  ;;  %v671_v6 = vmax.f32 %v267_v62, 0.0 }
 0x11b   :  { %v667_v4 = vmax.f32 %v265_v58, 0.0  ;;  %v675_v8 = vmax.f32 %v269_v0, 0.0  ;;  %v677_v9 = vmax.f32 %v268_v1, 0.0  ;;  %v681_v11 = vmax.f32 %v263_v3, 0.0 }
 0x11c   :  { %v283_v7 = vsel %vm279_vm1, %v663_v63, inf  ;;  %v290_v10 = vsel %vm279_vm1, %v665_v2, inf  ;;  %511 = vrsqrt.f32 %v669_v5  ;;  %v281_v17 = vsel %vm279_vm1, %v669_v5, inf }
 0x11d   :  { %v291_v12 = vmin.f32 %v283_v7, %v290_v10  ;;  %v282_v13 = vsel %vm279_vm1, %v667_v4, inf  ;;  %513 = vrsqrt.f32 %v671_v6  ;;  %v288_v14 = vsel %vm279_vm1, %v675_v8, inf }
 0x11e   :  { %515 = vrsqrt.f32 %v677_v9  ;;  %v289_v15 = vmin.f32 %v282_v13, %v288_v14  ;;  %v280_v16 = vsel %vm279_vm1, %v681_v11, inf  ;;  %v284_v18 = vsel %vm279_vm1, %v671_v6, inf }
 0x11f   :  { %v286_v19 = vsel %vm279_vm1, %v677_v9, inf  ;;  %v285_v21 = vmin.f32 %v280_v16, %v284_v18  ;;  %517 = vrsqrt.f32 %v663_v63  ;;  %v303_v30 = vadd.s32 8, %v660_v36 }
 0x120   :  { %v293_v20 = vmin.f32 %v289_v15, %v291_v12  ;;  %v287_v22 = vmin.f32 %v281_v17, %v286_v19  ;;  %519 = vrsqrt.f32 %v665_v2  ;;  %v304_v31 = vadd.s32 16, %v660_v36 }
 0x121   :  { %521 = vrsqrt.f32 %v667_v4  ;;  %v305_v32 = vadd.s32 24, %v660_v36  ;;  %v705_v33 = vadd.s32 32, %v660_v36  ;;  %v711_v35 = vadd.s32 48, %v660_v36 }
 0x122   :  { %v292_v23 = vmin.f32 %v285_v21, %v287_v22  ;;  %523 = vrsqrt.f32 %v675_v8  ;;  %vm366_vm2 = vcmp.eq.f32.partialorder %v669_v5, inf  ;;  %v309_v42 = vadd.s32 56, %v660_v36 }
 0x123   :  { %525 = vrsqrt.f32 %v681_v11  ;;  %vm368_vm3 = vcmp.eq.f32.partialorder %v669_v5, 0.0  ;;  %v369_v43 = vand.u32 2147483648, %v669_v5  ;;  %vm387_vm4 = vcmp.eq.f32.partialorder %v671_v6, inf }
 0x124   :  { %v294_v24 = vmin.f32 %v292_v23, %v293_v20  ;;  %vm389_vm5 = vcmp.eq.f32.partialorder %v671_v6, 0.0  ;;  %v390_v45 = vand.u32 2147483648, %v671_v6  ;;  %vm394_vm6 = vcmp.eq.f32.partialorder %v677_v9, inf }
 0x125   :  { %vm396_vm7 = vcmp.eq.f32.partialorder %v677_v9, 0.0  ;;  %v397_v53 = vand.u32 2147483648, %v677_v9  ;;  %vm380_vm8 = vcmp.eq.f32.partialorder %v663_v63, inf  ;;  %v383_v54 = vand.u32 2147483648, %v663_v63 }
 0x126   :  { %v512_v25 = vpop.eup %511  ;;  %v295_v26 = vrot.slane %v294_v24, 4  ;;  %v411_v55 = vand.u32 2147483648, %v665_v2  ;;  %v376_v56 = vand.u32 2147483648, %v667_v4  ;;  %v404_v57 = vand.u32 2147483648, %v675_v8 }
 0x127   :  { %v514_v27 = vpop.eup %513  ;;  %v365_v37 = vmul.f32 %v512_v25, %v669_v5  ;;  %v362_v62 = vand.u32 2147483648, %v681_v11  ;;  %vm408_vm9 = vcmp.eq.f32.partialorder %v665_v2, inf  ;;  %vm382_vm10 = vcmp.eq.f32.partialorder %v663_v63, 0.0 }
 0x128   :  { %v516_v28 = vpop.eup %515  ;;  %v296_v29 = vmin.f32 %v294_v24, %v295_v26  ;;  %v386_v38 = vmul.f32 %v514_v27, %v671_v6  ;;  %vm373_vm11 = vcmp.eq.f32.partialorder %v667_v4, inf  ;;  %vm401_vm0 = vcmp.eq.f32.partialorder %v675_v8, inf }
 0x129   :  { %v518_v40 = vpop.eup %517  ;;  %v393_v41 = vmul.f32 %v516_v28, %v677_v9  ;;  %v367_v47 = vsel %vm366_vm2, %v669_v5, %v365_v37  ;;  %vm403_vm2 = vcmp.eq.f32.partialorder %v675_v8, 0.0 }
 0x12a   :  { %v297_v39 = vrot.slane %v296_v29, 2  ;;  %v520_v46 = vpop.eup %519  ;;  %v388_v48 = vsel %vm387_vm4, %v671_v6, %v386_v38  ;;  %v379_v49 = vmul.f32 %v518_v40, %v663_v63  ;;  %v741_v59 = vsel %vm368_vm3, %v369_v43, %v367_v47 }
 0x12b   :  { %v522_v51 = vpop.eup %521  ;;  %v395_v52 = vsel %vm394_vm6, %v677_v9, %v393_v41  ;;  %v745_v60 = vsel %vm389_vm5, %v390_v45, %v388_v48  ;;  %v407_v61 = vmul.f32 %v520_v46, %v665_v2 }
 0x12c   :  { %v298_v44 = vmin.f32 %v296_v29, %v297_v39  ;;  %v751_v0 = vsel %vm396_vm7, %v397_v53, %v395_v52  ;;  %v381_v1 = vsel %vm380_vm8, %v663_v63, %v379_v49  ;;  %v372_v3 = vmul.f32 %v522_v51, %v667_v4  ;;  %v524_v7 = vpop.eup %523 }
 0x12d   :  { %vm375_vm8 = vcmp.eq.f32.partialorder %v667_v4, 0.0  ;;  %v400_v17 = vmul.f32 %v524_v7, %v675_v8  ;;  %vm361_vm7 = vcmp.eq.f32.partialorder %v681_v11, 0.0  ;;  %v409_v28 = vsel %vm408_vm9, %v665_v2, %v407_v61 }
 0x12e   :  { %v299_v50 = vrot.slane %v298_v44, 1  ;;  %vm882_vm9 = vcmp.eq.f32.partialorder %v681_v11, inf }
 0x130   :  { %v737_v58 = vmin.f32 %v298_v44, %v299_v50 }
 0x132   :  { %527 = vrsqrt.f32 %v737_v58  ;;  %vm310_vm12 = vcmp.eq.f32.partialorder %v681_v11, %v737_v58  ;;  %vm311_vm13 = vcmp.eq.f32.partialorder %v669_v5, %v737_v58  ;;  %vm312_vm14 = vcmp.eq.f32.partialorder %v667_v4, %v737_v58  ;;  %v526_v5 = vpop.eup %525 }
 0x133   :  { %vm313_vm15 = vcmp.eq.f32.partialorder %v663_v63, %v737_v58  ;;  %vm314_vm3 = vcmp.eq.f32.partialorder %v671_v6, %v737_v58  ;;  %vm315_vm4 = vcmp.eq.f32.partialorder %v677_v9, %v737_v58  ;;  %vm316_vm5 = vcmp.eq.f32.partialorder %v675_v8, %v737_v58 }
 0x134   :  { %vm317_vm6 = vcmp.eq.f32.partialorder %v665_v2, %v737_v58  ;;  %v318_v10 = vsel %vm310_vm12, %v660_v36, 64  ;;  %v319_v12 = vsel %vm311_vm13, %v303_v30, 64  ;;  %v320_v13 = vsel %vm312_vm14, %v304_v31, 64 }
 0x135   :  { %v321_v14 = vsel %vm313_vm15, %v305_v32, 64  ;;  %v322_v6 = vsel %vm314_vm3, %v705_v33, 64  ;;  %v323_v9 = vsel %vm315_vm4, %v708_v34, 64  ;;  %v324_v15 = vsel %vm316_vm5, %v711_v35, 64 }
 0x136   :  { %v325_v16 = vsel %vm317_vm6, %v309_v42, 64  ;;  %v326_v36 = vsel %vm279_vm1, %v318_v10, 2147483647  ;;  %v327_v18 = vsel %vm279_vm1, %v319_v12, 2147483647  ;;  %v358_v20 = vmul.f32 %v526_v5, %v681_v11 }
 0x137   :  { %v328_v19 = vsel %vm279_vm1, %v320_v13, 2147483647  ;;  %v329_v21 = vsel %vm279_vm1, %v321_v14, 2147483647  ;;  %v330_v22 = vsel %vm279_vm1, %v322_v6, 2147483647  ;;  %v384_v32 = vsel %vm382_vm10, %v383_v54, %v381_v1 }
 0x138   :  { %v333_v23 = vsel %vm279_vm1, %v323_v9, 2147483647  ;;  %vm331_vm12 = vcmp.lt.s32.totalorder %v326_v36, %v330_v22  ;;  %v336_v24 = vsel %vm279_vm1, %v324_v15, 2147483647  ;;  %v339_v25 = vsel %vm279_vm1, %v325_v16, 2147483647 }
 0x139   :  { %vm334_vm13 = vcmp.lt.s32.totalorder %v327_v18, %v333_v23  ;;  %v332_v26 = vsel %vm331_vm12, %v326_v36, %v330_v22  ;;  %vm337_vm14 = vcmp.lt.s32.totalorder %v328_v19, %v336_v24  ;;  %vm340_vm15 = vcmp.lt.s32.totalorder %v329_v21, %v339_v25 }
 0x13a   :  { %v335_v27 = vsel %vm334_vm13, %v327_v18, %v333_v23  ;;  %v338_v29 = vsel %vm337_vm14, %v328_v19, %v336_v24  ;;  %v341_v30 = vsel %vm340_vm15, %v329_v21, %v339_v25  ;;  %v374_v33 = vsel %vm373_vm11, %v667_v4, %v372_v3 }
 0x13b   :  { %vm342_vm3 = vcmp.lt.s32.totalorder %v332_v26, %v335_v27  ;;  %vm344_vm4 = vcmp.lt.s32.totalorder %v338_v29, %v341_v30  ;;  %v402_v35 = vsel %vm401_vm0, %v675_v8, %v400_v17  ;;  %v360_v37 = vsel %vm882_vm9, %v681_v11, %v358_v20 }
 0x13c   :  { %v528_v31 = vpop.eup %527  ;;  %v343_v34 = vsel %vm342_vm3, %v332_v26, %v335_v27  ;;  %v345_v39 = vsel %vm344_vm4, %v338_v29, %v341_v30  ;;  %vm883_vm10 = vcmp.eq.f32.partialorder %v665_v2, 0.0  ;;  %vm415_vm11 = vcmp.eq.f32.partialorder %v737_v58, inf }
 0x13d   :  { %v414_v38 = vmul.f32 %v528_v31, %v737_v58  ;;  %v412_v63 = vsel %vm883_vm10, %v411_v55, %v409_v28  ;;  %v418_v40 = vand.u32 2147483648, %v737_v58  ;;  %vm346_vm5 = vcmp.lt.s32.totalorder %v343_v34, %v345_v39 }
 0x13e   :  { %v377_v41 = vsel %vm375_vm8, %v376_v56, %v374_v33  ;;  %vm417_vm0 = vcmp.eq.f32.partialorder %v737_v58, 0.0  ;;  %v347_v43 = vsel %vm346_vm5, %v343_v34, %v345_v39  ;;  %v405_v2 = vsel %vm403_vm2, %v404_v57, %v402_v35 }
 0x13f   :  { %v416_v42 = vsel %vm415_vm11, %v737_v58, %v414_v38  ;;  %v363_v44 = vsel %vm361_vm7, %v362_v62, %v360_v37  ;;  %v348_v46 = vrot.slane %v347_v43, 4  ;;  %vm452_vm7 = vcmask 57344  }
 0x140   :  { %v419_v45 = vsel %vm417_vm0, %v418_v40, %v416_v42 }
 0x141   :  { %v420_v47 = vsub.f32 %v419_v45, %v363_v44  ;;  %v421_v4 = vsub.f32 %v419_v45, %v741_v59  ;;  %v422_v48 = vsub.f32 %v419_v45, %v377_v41  ;;  %v423_v49 = vsub.f32 %v419_v45, %v384_v32 }
 0x142   :  { %v424_v50 = vsub.f32 %v419_v45, %v745_v60  ;;  %v425_v51 = vsub.f32 %v419_v45, %v751_v0  ;;  %v426_v52 = vsub.f32 %v419_v45, %v405_v2  ;;  %v427_v53 = vsub.f32 %v419_v45, %v412_v63 }
 0x143   :  { %v428_v8 = vmul.f32 1.442695, %v420_v47  ;;  %v430_v54 = vmul.f32 1.442695, %v421_v4  ;;  %v432_v55 = vmul.f32 1.442695, %v422_v48  ;;  %vm349_vm2 = vcmp.lt.s32.totalorder %v347_v43, %v348_v46 }
 0x144   :  { %v434_v56 = vmul.f32 1.442695, %v423_v49  ;;  %v350_v11 = vsel %vm349_vm2, %v347_v43, %v348_v46  ;;  %v436_v57 = vmul.f32 1.442695, %v424_v50  ;;  %v438_v61 = vmul.f32 1.442695, %v425_v51 }
 0x145   :  { %529 = vpow2.f32 %v428_v8  ;;  %v351_v58 = vrot.slane %v350_v11, 2  ;;  %v440_v59 = vmul.f32 1.442695, %v426_v52  ;;  %v442_v60 = vmul.f32 1.442695, %v427_v53 }
 0x146   :  { %531 = vpow2.f32 %v430_v54 }
 0x147   :  { %533 = vpow2.f32 %v432_v55  ;;  %vm352_vm6 = vcmp.lt.s32.totalorder %v350_v11, %v351_v58 }
 0x148   :  { %535 = vpow2.f32 %v434_v56  ;;  %v353_v62 = vsel %vm352_vm6, %v350_v11, %v351_v58 }
 0x149   :  { %537 = vpow2.f32 %v436_v57  ;;  %v354_v0 = vrot.slane %v353_v62, 1 }
 0x14a   :  { %539 = vpow2.f32 %v438_v61 }
 0x14b   :  { %541 = vpow2.f32 %v440_v59  ;;  %vm355_vm8 = vcmp.lt.s32.totalorder %v353_v62, %v354_v0 }
 0x14c   :  { %543 = vpow2.f32 %v442_v60  ;;  %v356_v1 = vsel %vm355_vm8, %v353_v62, %v354_v0 }
 0x14d   :  { %453 = vst.msk [vmem:[#allocation2] sm:$0x1] %vm452_vm7, %v356_v1 }
 0x14e   :  { %556 = shalt.err (!%p553_p4)
}
 0x14f   :  { %s557_s25 = scalar_lea.hbm %s881_s4, 16 }
 0x150   :  { %p558_p5 = scmp.ne.s32.totalorder %s881_s4, %s557_s25  ;;  %p561_p6 = scmp.lt.u32.totalorder %s557_s25, %s881_s4 }
 0x152   :  { %p563_p7 = pnand %p561_p6, %p558_p5 }
 0x154   :  { %566 = shalt.err (!%p563_p7)
}
 0x155   :  { %465 = dma.vmem_to_hbm [thread:$0]  %s463_s21, 16, %s881_s4, [#allocation3]   ;;  %v530_v3 = vpop.eup %529 }
 0x156   :  { %v532_v7 = vpop.eup %531  ;;  %444 = vst.msk [vmem:[%s880_s3] sm:$0xff] %vm279_vm1, %v530_v3 }
 0x157   :  { %v534_v5 = vpop.eup %533  ;;  %445 = vst.msk [vmem:[%s880_s3 + $0x8] sm:$0xff] %vm279_vm1, %v532_v7 }
 0x158   :  { %v536_v10 = vpop.eup %535  ;;  %446 = vst.msk [vmem:[%s880_s3 + $0x10] sm:$0xff] %vm279_vm1, %v534_v5 }
 0x159   :  { %v538_v12 = vpop.eup %537  ;;  %447 = vst.msk [vmem:[%s880_s3 + $0x18] sm:$0xff] %vm279_vm1, %v536_v10 }
 0x15a   :  { %v540_v13 = vpop.eup %539  ;;  %448 = vst.msk [vmem:[%s880_s3 + $0x20] sm:$0xff] %vm279_vm1, %v538_v12 }
 0x15b   :  { %v542_v14 = vpop.eup %541  ;;  %449 = vst.msk [vmem:[%s880_s3 + $0x28] sm:$0xff] %vm279_vm1, %v540_v13 }
 0x15c   :  { %v544_v6 = vpop.eup %543  ;;  %450 = vst.msk [vmem:[%s880_s3 + $0x30] sm:$0xff] %vm279_vm1, %v542_v14 }
 0x15d   :  { %451 = vst.msk [vmem:[%s880_s3 + $0x38] sm:$0xff] %vm279_vm1, %v544_v6 }
 0x15e   :  { %567 = dma.done.wait [#allocation3], 16  }
 0x15f   :  { %568 = vsyncadd [#allocation3], 4294967280 }
 0x160   :  { %471 = vsyncpa [#allocation3], 1 }

</bundles_post_ra>
